<compile_context>
chip_gen: v7x
topology: tpu7x:2x2x1
jax: 0.10.0
libtpu: 0.0.40
codegen_flags: <defaults>
</compile_context>

<pallas_src>
import functools

import jax
import jax.numpy as jnp
from jax.experimental import pallas as pl
from jax.experimental.pallas import tpu as pltpu


def _round_up(x: int, m: int) -> int:
    return ((x + m - 1) // m) * m


def _cdiv(a: int, b: int) -> int:
    return (a + b - 1) // b


def _vmem_cap_bytes() -> int:
    """~3/4 of physical VMEM (48 MiB on v7x, 96 MiB on v5e/v6e); safe fallback."""
    try:
        phys = int(pltpu.get_tpu_info().vmem_capacity_bytes)
    except Exception:
        phys = 64 << 20  # conservative: v7x has the smallest VMEM
    return max(16 << 20, (phys * 3) // 4)


_VMEM_CAP = _vmem_cap_bytes()


# ----------------------------------------------------------------------------
# Kernels
# ----------------------------------------------------------------------------
def ffn_kernel_resident(x_ref, w1_ref, b1_ref, w2_ref, b2_ref, o_ref):
    # x_ref : (TM, dm_p)    w1_ref: (dm_p, df_p)   b1_ref: (1, df_p)  f32
    # w2_ref: (df_p, dm_p)  b2_ref: (1, dm_p) f32  o_ref : (TM, dm_p)
    x = x_ref[...].astype(w1_ref.dtype)       # in-kernel cast to compute dtype
    h = jnp.dot(x, w1_ref[...], preferred_element_type=jnp.float32) + b1_ref[...]
    h = jnp.maximum(h, 0.0)
    y = jnp.dot(h.astype(w2_ref.dtype), w2_ref[...],
                preferred_element_type=jnp.float32) + b2_ref[...]
    o_ref[...] = y.astype(o_ref.dtype)


def ffn_kernel_ff_tiled(x_ref, w1_ref, b1_ref, w2_ref, b2_ref, o_ref, acc_ref):
    # Grid = (row tiles, ff tiles); ff (last axis) is the reduction axis.
    ff = pl.program_id(1)

    @pl.when(ff == 0)
    def _():
        acc_ref[...] = jnp.zeros_like(acc_ref)

    x = x_ref[...].astype(w1_ref.dtype)
    h = jnp.dot(x, w1_ref[...], preferred_element_type=jnp.float32) + b1_ref[...]
    h = jnp.maximum(h, 0.0)
    acc_ref[...] += jnp.dot(h.astype(w2_ref.dtype), w2_ref[...],
                            preferred_element_type=jnp.float32)

    @pl.when(ff == pl.num_programs(1) - 1)
    def _():
        o_ref[...] = (acc_ref[...] + b2_ref[...]).astype(o_ref.dtype)


# ----------------------------------------------------------------------------
# VMEM working-set estimates (inputs counted 2x: Pallas double-buffers them)
# ----------------------------------------------------------------------------
def _resident_bytes(tm, dm_p, df_p, xb, ob, cb):
    return (2 * 2 * dm_p * df_p * cb          # W1 + W2, double-buffered
            + 2 * (df_p + dm_p) * 4           # biases (f32), double-buffered
            + 2 * tm * dm_p * xb              # x tiles (double-buffered)
            + 2 * tm * dm_p * ob              # out tiles (double-buffered)
            + tm * df_p * 4                   # f32 intermediate h
            + tm * df_p * cb)                 # h cast fed to the 2nd dot


def _ff_tiled_bytes(tm, tf, dm_p, xb, ob, cb):
    return (2 * 2 * dm_p * tf * cb            # W1 col-slab + W2 row-slab, dbl-buf
            + 2 * (tf + dm_p) * 4             # biases, double-buffered
            + 2 * tm * dm_p * xb              # x tiles
            + 2 * tm * dm_p * ob              # out tiles
            + tm * dm_p * 4                   # f32 accumulator (scratch)
            + tm * tf * 4                     # f32 h tile
            + tm * tf * cb)                   # h cast


# ----------------------------------------------------------------------------
# Wrapper
# ----------------------------------------------------------------------------
@functools.partial(
    jax.jit,
    static_argnames=("block_rows", "compute_dtype", "out_dtype", "ff_block"))
def positionwise_ffn(x, w1, b1, w2, b2, *, block_rows=512,
                     compute_dtype=jnp.bfloat16, out_dtype=None, ff_block=None):
    """x: (batch, seq, d_model).  Weights stored as (in, out) so the kernel
    computes x @ W directly (== PyTorch x @ weight.T).  Dropout = identity."""
    batch, seq, d_model = x.shape
    d_ff = w1.shape[1]
    rows = batch * seq
    if out_dtype is None:
        out_dtype = x.dtype

    xb = jnp.dtype(x.dtype).itemsize
    ob = jnp.dtype(out_dtype).itemsize
    cb = jnp.dtype(compute_dtype).itemsize

    # --- tiling --------------------------------------------------------------
    dm_p = _round_up(d_model, 128)            # lane-dense loads & stores
    df_p = _round_up(d_ff, 128)
    # Target >= 2 row tiles so a v7x megacore can shard the "parallel" axis.
    tm = min(block_rows, max(8, _round_up(_cdiv(rows, 2), 8)))
    budget = _VMEM_CAP

    tf = None                                 # None => weights fully resident
    if ff_block is not None:
        tf = min(_round_up(ff_block, 128), df_p)
    elif _resident_bytes(tm, dm_p, df_p, xb, ob, cb) > budget:
        for cand in (4096, 2048, 1024, 512, 256, 128):
            if cand <= df_p and _ff_tiled_bytes(tm, cand, dm_p, xb, ob, cb) <= budget:
                tf = cand
                break
        if tf is None:
            tf = 128
            while tm > 8 and _ff_tiled_bytes(tm, tf, dm_p, xb, ob, cb) > budget:
                tm = max(8, _round_up(tm // 2, 8))

    rows_p = _round_up(rows, tm)
    df_pp = df_p if tf is None else _round_up(df_p, tf)

    # --- pad (no-ops when already aligned: common production case) ------------
    x2d = x.reshape(rows, d_model)            # original dtype; cast in-kernel
    if rows_p != rows or dm_p != d_model:
        x2d = jnp.pad(x2d, ((0, rows_p - rows), (0, dm_p - d_model)))
    w1p = w1.astype(compute_dtype)
    if dm_p != d_model or df_pp != d_ff:
        w1p = jnp.pad(w1p, ((0, dm_p - d_model), (0, df_pp - d_ff)))
    b1p = b1.reshape(1, d_ff).astype(jnp.float32)
    if df_pp != d_ff:
        b1p = jnp.pad(b1p, ((0, 0), (0, df_pp - d_ff)))
    w2p = w2.astype(compute_dtype)
    if df_pp != d_ff or dm_p != d_model:
        w2p = jnp.pad(w2p, ((0, df_pp - d_ff), (0, dm_p - d_model)))
    b2p = b2.reshape(1, d_model).astype(jnp.float32)
    if dm_p != d_model:
        b2p = jnp.pad(b2p, ((0, 0), (0, dm_p - d_model)))

    # --- VMEM limit + cost hint ------------------------------------------------
    working = (_resident_bytes(tm, dm_p, df_pp, xb, ob, cb) if tf is None
               else _ff_tiled_bytes(tm, tf, dm_p, xb, ob, cb))
    vmem_limit = max(16 << 20, min(int(1.25 * working) + (2 << 20), budget))

    cost = pl.CostEstimate(
        flops=4 * rows_p * dm_p * df_pp,      # two dots, 2*M*N*K each
        transcendentals=0,
        bytes_accessed=int(rows_p * dm_p * (xb + ob)
                           + 2 * dm_p * df_pp * cb + (df_pp + dm_p) * 4),
    )

    if tf is None:
        out2d = pl.pallas_call(
            ffn_kernel_resident,
            out_shape=jax.ShapeDtypeStruct((rows_p, dm_p), out_dtype),
            grid=(rows_p // tm,),
            in_specs=[
                pl.BlockSpec((tm, dm_p), lambda i: (i, 0)),     # x row tile
                pl.BlockSpec((dm_p, df_pp), lambda i: (0, 0)),  # W1 resident
                pl.BlockSpec((1, df_pp), lambda i: (0, 0)),     # b1 resident
                pl.BlockSpec((df_pp, dm_p), lambda i: (0, 0)),  # W2 resident
                pl.BlockSpec((1, dm_p), lambda i: (0, 0)),      # b2 resident
            ],
            out_specs=pl.BlockSpec((tm, dm_p), lambda i: (i, 0)),
            compiler_params=pltpu.CompilerParams(
                dimension_semantics=("parallel",),
                vmem_limit_bytes=vmem_limit),
            cost_estimate=cost,
        )(x2d, w1p, b1p, w2p, b2p)
    else:
        out2d = pl.pallas_call(
            ffn_kernel_ff_tiled,
            out_shape=jax.ShapeDtypeStruct((rows_p, dm_p), out_dtype),
            grid=(rows_p // tm, df_pp // tf),
            in_specs=[
                pl.BlockSpec((tm, dm_p), lambda i, j: (i, 0)),  # x row tile
                pl.BlockSpec((dm_p, tf), lambda i, j: (0, j)),  # W1 column slab
                pl.BlockSpec((1, tf), lambda i, j: (0, j)),     # b1 slab
                pl.BlockSpec((tf, dm_p), lambda i, j: (j, 0)),  # W2 row slab
                pl.BlockSpec((1, dm_p), lambda i, j: (0, 0)),   # b2 resident
            ],
            out_specs=pl.BlockSpec((tm, dm_p), lambda i, j: (i, 0)),
            scratch_shapes=[pltpu.VMEM((tm, dm_p), jnp.float32)],
            compiler_params=pltpu.CompilerParams(
                dimension_semantics=("parallel", "arbitrary"),
                vmem_limit_bytes=vmem_limit),
            cost_estimate=cost,
        )(x2d, w1p, b1p, w2p, b2p)

    if rows_p != rows or dm_p != d_model:
        out2d = out2d[:rows, :d_model]
    return out2d.reshape(batch, seq, d_model)


if __name__ == "__main__":
    # Small shapes consistent with the module: batch=2, seq=8, d_model=32, d_ff=64
    batch, seq, d_model, d_ff = 2, 8, 32, 64

    key = jax.random.PRNGKey(0)
    kx, kw1, kb1, kw2, kb2 = jax.random.split(key, 5)

    x = jax.random.normal(kx, (batch, seq, d_model), dtype=jnp.float32)

    # Deterministic param init (Kaiming-uniform-ish bound, like nn.Linear defaults).
    bound1 = 1.0 / (d_model ** 0.5)
    bound2 = 1.0 / (d_ff ** 0.5)
    # Stored as (in_features, out_features) so the kernel does x @ W directly
    # (equivalent to PyTorch's x @ weight.T with weight of shape (out, in)).
    w1 = jax.random.uniform(kw1, (d_model, d_ff), minval=-bound1, maxval=bound1,
                            dtype=jnp.float32)
    b1 = jax.random.uniform(kb1, (1, d_ff), minval=-bound1, maxval=bound1,
                            dtype=jnp.float32)
    w2 = jax.random.uniform(kw2, (d_ff, d_model), minval=-bound2, maxval=bound2,
                            dtype=jnp.float32)
    b2 = jax.random.uniform(kb2, (1, d_model), minval=-bound2, maxval=bound2,
                            dtype=jnp.float32)

    # Pure-JAX reference (same math, eval-mode dropout).
    ref = jnp.maximum(x.reshape(-1, d_model) @ w1 + b1, 0.0) @ w2 + b2
    ref = ref.reshape(batch, seq, d_model)

    # Explicit f32 compute path: tight match.
    out_f32 = jax.block_until_ready(
        positionwise_ffn(x, w1, b1, w2, b2, compute_dtype=jnp.float32))
    assert out_f32.shape == ref.shape
    assert jnp.allclose(out_f32, ref, atol=1e-5, rtol=1e-5), "f32 mismatch vs reference"

    # Default mixed-precision path (bf16 MXU operands, f32 accumulation).
    out_bf16 = jax.block_until_ready(positionwise_ffn(x, w1, b1, w2, b2))
    assert out_bf16.dtype == x.dtype
    assert jnp.allclose(out_bf16, ref, atol=1e-1, rtol=5e-2), "bf16 mismatch vs reference"

    # Exercise the d_ff-tiled (accumulator) plan used on v7x / large d_ff:
    # d_ff split into two 128-wide slabs, f32 accumulation across the ff axis.
    d_ff2 = 256
    kw1b, kw2b = jax.random.split(kw2, 2)
    kb1b = jax.random.fold_in(kb1, 1)
    w1b = jax.random.uniform(kw1b, (d_model, d_ff2), minval=-bound1, maxval=bound1,
                             dtype=jnp.float32)
    b1b = jax.random.uniform(kb1b, (1, d_ff2), minval=-bound1, maxval=bound1,
                             dtype=jnp.float32)
    w2b = jax.random.uniform(kw2b, (d_ff2, d_model), minval=-bound2, maxval=bound2,
                             dtype=jnp.float32)
    ref2 = (jnp.maximum(x.reshape(-1, d_model) @ w1b + b1b, 0.0) @ w2b + b2)
    ref2 = ref2.reshape(batch, seq, d_model)
    out_tiled = jax.block_until_ready(
        positionwise_ffn(x, w1b, b1b, w2b, b2,
                         compute_dtype=jnp.float32, ff_block=128))
    assert jnp.allclose(out_tiled, ref2, atol=1e-5, rtol=1e-5), \
        "ff-tiled mismatch vs reference"

    print("KERNEL_OK")
</pallas_src>

<mosaic_0001>
module attributes {stable_mosaic.version = 11 : i64} {
  func.func @ffn_kernel_resident(%arg0: i32, %arg1: memref<8x128xf32, #tpu.memory_space<vmem>>, %arg2: memref<128x128xf32, #tpu.memory_space<vmem>>, %arg3: memref<1x128xf32, #tpu.memory_space<vmem>>, %arg4: memref<128x128xf32, #tpu.memory_space<vmem>>, %arg5: memref<1x128xf32, #tpu.memory_space<vmem>>, %arg6: memref<8x128xf32, #tpu.memory_space<vmem>>) attributes {dimension_semantics = [#tpu.dimension_semantics<parallel>], iteration_bounds = array<i64: 2>, scalar_prefetch = 0 : i64, scratch_operands = 0 : i64, tpu.core_type = #tpu.core_type<tc>, window_params = [{transform_indices = @transform_0, window_bounds = array<i64: 8, 128>}, {pipeline_mode = #tpu.pipeline_mode<synchronous>, transform_indices = @transform_1, window_bounds = array<i64: 128, 128>}, {pipeline_mode = #tpu.pipeline_mode<synchronous>, transform_indices = @transform_2, window_bounds = array<i64: 1, 128>}, {pipeline_mode = #tpu.pipeline_mode<synchronous>, transform_indices = @transform_3, window_bounds = array<i64: 128, 128>}, {pipeline_mode = #tpu.pipeline_mode<synchronous>, transform_indices = @transform_4, window_bounds = array<i64: 1, 128>}, {transform_indices = @transform_5, window_bounds = array<i64: 8, 128>}]} {
    %c0 = arith.constant 0 : index
    %c0_0 = arith.constant 0 : index
    %0 = vector.load %arg1[%c0, %c0_0] : memref<8x128xf32, #tpu.memory_space<vmem>>, vector<8x128xf32>
    %c0_1 = arith.constant 0 : index
    %c0_2 = arith.constant 0 : index
    %1 = vector.load %arg2[%c0_1, %c0_2] : memref<128x128xf32, #tpu.memory_space<vmem>>, vector<128x128xf32>
    %cst = arith.constant dense<0.000000e+00> : vector<8x128xf32>
    %2 = tpu.matmul %0, %1, %cst {dimension_numbers = #tpu.dot_dimension_numbers<[1], [0], [0], [1], [0, 0, 1, 1], [], []>} : vector<8x128xf32>, vector<128x128xf32>, vector<8x128xf32> -> vector<8x128xf32>
    %c0_3 = arith.constant 0 : index
    %c0_4 = arith.constant 0 : index
    %3 = vector.load %arg3[%c0_3, %c0_4] : memref<1x128xf32, #tpu.memory_space<vmem>>, vector<1x128xf32>
    %4 = vector.broadcast %3 : vector<1x128xf32> to vector<8x128xf32>
    %5 = arith.addf %2, %4 : vector<8x128xf32>
    %cst_5 = arith.constant 0.000000e+00 : f32
    %6 = vector.broadcast %cst_5 : f32 to vector<8x128xf32>
    %7 = arith.maximumf %5, %6 : vector<8x128xf32>
    %c0_6 = arith.constant 0 : index
    %c0_7 = arith.constant 0 : index
    %8 = vector.load %arg4[%c0_6, %c0_7] : memref<128x128xf32, #tpu.memory_space<vmem>>, vector<128x128xf32>
    %cst_8 = arith.constant dense<0.000000e+00> : vector<8x128xf32>
    %9 = tpu.matmul %7, %8, %cst_8 {dimension_numbers = #tpu.dot_dimension_numbers<[1], [0], [0], [1], [0, 0, 1, 1], [], []>} : vector<8x128xf32>, vector<128x128xf32>, vector<8x128xf32> -> vector<8x128xf32>
    %c0_9 = arith.constant 0 : index
    %c0_10 = arith.constant 0 : index
    %10 = vector.load %arg5[%c0_9, %c0_10] : memref<1x128xf32, #tpu.memory_space<vmem>>, vector<1x128xf32>
    %11 = vector.broadcast %10 : vector<1x128xf32> to vector<8x128xf32>
    %12 = arith.addf %9, %11 : vector<8x128xf32>
    %c0_11 = arith.constant 0 : index
    %c0_12 = arith.constant 0 : index
    %13 = vector.load %arg6[%c0_11, %c0_12] : memref<8x128xf32, #tpu.memory_space<vmem>>, vector<8x128xf32>
    tpu.vector_store %arg6[%c0_11, %c0_12], %12 {strides = array<i32>} : memref<8x128xf32, #tpu.memory_space<vmem>>, vector<8x128xf32>,
    return
  }
  func.func @transform_0(%arg0: i32) -> (i32, i32) {
    %c0_i32 = arith.constant 0 : i32
    %c0_i32_0 = arith.constant 0 : i32
    return %arg0, %c0_i32 : i32, i32
  }
  func.func @transform_1(%arg0: i32) -> (i32, i32) {
    %c0_i32 = arith.constant 0 : i32
    %c0_i32_0 = arith.constant 0 : i32
    %c0_i32_1 = arith.constant 0 : i32
    return %c0_i32, %c0_i32_0 : i32, i32
  }
  func.func @transform_2(%arg0: i32) -> (i32, i32) {
    %c0_i32 = arith.constant 0 : i32
    %c0_i32_0 = arith.constant 0 : i32
    %c0_i32_1 = arith.constant 0 : i32
    return %c0_i32, %c0_i32_0 : i32, i32
  }
  func.func @transform_3(%arg0: i32) -> (i32, i32) {
    %c0_i32 = arith.constant 0 : i32
    %c0_i32_0 = arith.constant 0 : i32
    %c0_i32_1 = arith.constant 0 : i32
    return %c0_i32, %c0_i32_0 : i32, i32
  }
  func.func @transform_4(%arg0: i32) -> (i32, i32) {
    %c0_i32 = arith.constant 0 : i32
    %c0_i32_0 = arith.constant 0 : i32
    %c0_i32_1 = arith.constant 0 : i32
    return %c0_i32, %c0_i32_0 : i32, i32
  }
  func.func @transform_5(%arg0: i32) -> (i32, i32) {
    %c0_i32 = arith.constant 0 : i32
    %c0_i32_0 = arith.constant 0 : i32
    return %arg0, %c0_i32 : i32, i32
  }
}

</mosaic_0001>

<bundles_post_ra>
// kernel: positionwise_ffn.1
= control target key start
LH: loop header
LB: loop body
LE: loop exit
PB: predicated region body
PF: predicated region fallthrough
CT: control target
= control target key end

     0   :  { %s677_s18 = smov 0   ;;  %s819_s0 = inlined_call_operand.vmem [shape: f32[16,128], index: 0, kind: input, shape index: {}]   ;;  %s820_s1 = inlined_call_operand.vmem [shape: f32[128,128], index: 1, kind: input, shape index: {}]   ;;  %s821_s2 = inlined_call_operand.vmem [shape: f32[1,128], index: 2, kind: input, shape index: {}]   ;;  %s822_s3 = inlined_call_operand.vmem [shape: f32[128,128], index: 3, kind: input, shape index: {}]   ;;  %s823_s4 = inlined_call_operand.vmem [shape: f32[1,128], index: 4, kind: input, shape index: {}]   ;;  %s824_s5 = inlined_call_operand.vmem [shape: f32[16,128], index: 5, kind: output, shape index: {}]  }
   0x1 LB: > { %s462_s19 = sadd.s32 4294967295, %s642_s18   ;;  %p466_p0 = scmp.ge.s32.totalorder %s642_s18, 1  ;;  %s642_s18 = sphi %s677_s18, %s15_s18  }
   0x2   : > { %p186_p1 = scmp.lt.s32.totalorder %s642_s18, 3 }
   0x4   : > { %p187_p2 = pnand %p466_p0, %p186_p1 }
   0x5   : > { %v221_v0 = vld [vmem:[%s820_s1] sm:$0xff] (!%p187_p2)  ;;  %v222_v1 = vld [vmem:[%s820_s1 + $0x8] sm:$0xff] (!%p187_p2)  ;;  %v223_v2 = vld [vmem:[%s820_s1 + $0x10] sm:$0xff] (!%p187_p2)  ;;  %v644_v3 = vmov (!%p187_p2), 0.0|0.0   ;;  %vm645_vm0 = vmmov (!%p187_p2), 0   ;;  %v646_v6 = vmov (!%p187_p2), 0.0  }
   0x6   : > { %190 = sbr.rel (%p187_p2) target bundleno = 470 (0x1d6), region = 40  ;;  %577 = vmatprep.subr.bf16.mxu0 (!%p187_p2), %v644_v3  ;;  %v578_v4 = vpack.c.bf16 (!%p187_p2), %v222_v1, %v221_v0  ;;  %v224_v5 = vld [vmem:[%s820_s1 + $0x18] sm:$0xff] (!%p187_p2)  ;;  %539 = vmatprep.mubr.msk.f32.mxu0 (!%p187_p2), %vm645_vm0, %v646_v6  ;;  %v225_v8 = vld [vmem:[%s820_s1 + $0x20] sm:$0xff] (!%p187_p2)  ;;  %v226_v9 = vld [vmem:[%s820_s1 + $0x28] sm:$0xff] (!%p187_p2)  ;;  %p212_p3 = scmp.lt.s32.totalorder (!%p187_p2), %s462_s19, 1 }
   0x7   : > { %601 = vmatprep.subr.bf16.mxu1 (!%p187_p2), %v644_v3  ;;  %574 = vmatprep.mubr.msk.f32.mxu1 (!%p187_p2), %vm645_vm0, %v646_v6  ;;  %v581_v7 = vpack.c.bf16 (!%p187_p2), %v224_v5, %v223_v2  ;;  %v315_v10 = vld [vmem:[%s822_s3] sm:$0xff] (!%p187_p2)  ;;  %v316_v11 = vld [vmem:[%s822_s3 + $0x8] sm:$0xff] (!%p187_p2)  ;;  %v317_v13 = vld [vmem:[%s822_s3 + $0x10] sm:$0xff] (!%p187_p2)  ;;  %v584_v15 = vpack.c.bf16 (!%p187_p2), %v226_v9, %v225_v8 }
   0x8   : > { %579 = vmatpush3.bf16.msra.mxu0 (!%p187_p2), %v578_v4  ;;  %v602_v12 = vpack.c.bf16 (!%p187_p2), %v316_v11, %v315_v10  ;;  %v318_v14 = vld [vmem:[%s822_s3 + $0x18] sm:$0xff] (!%p187_p2)  ;;  %v227_v16 = vld [vmem:[%s820_s1 + $0x30] sm:$0xff] (!%p187_p2)  ;;  %v319_v19 = vld [vmem:[%s822_s3 + $0x20] sm:$0xff] (!%p187_p2) }
   0x9   : > { %580 = vmatprep.subr.bf16.mxu0 (!%p187_p2), %v644_v3  ;;  %v228_v17 = vld [vmem:[%s820_s1 + $0x38] sm:$0xff] (!%p187_p2)  ;;  %v605_v18 = vpack.c.bf16 (!%p187_p2), %v318_v14, %v317_v13  ;;  %v320_v20 = vld [vmem:[%s822_s3 + $0x28] sm:$0xff] (!%p187_p2)  ;;  %v229_v22 = vld [vmem:[%s820_s1 + $0x40] sm:$0xff] (!%p187_p2) }
   0xa   : > { %603 = vmatpush3.bf16.msra.mxu1 (!%p187_p2), %v602_v12  ;;  %v587_v21 = vpack.c.bf16 (!%p187_p2), %v228_v17, %v227_v16  ;;  %v230_v23 = vld [vmem:[%s820_s1 + $0x48] sm:$0xff] (!%p187_p2)  ;;  %v608_v24 = vpack.c.bf16 (!%p187_p2), %v320_v20, %v319_v19  ;;  %v321_v25 = vld [vmem:[%s822_s3 + $0x30] sm:$0xff] (!%p187_p2)  ;;  %v322_v26 = vld [vmem:[%s822_s3 + $0x38] sm:$0xff] (!%p187_p2) }
   0xb   : > { %604 = vmatprep.subr.bf16.mxu1 (!%p187_p2), %v644_v3  ;;  %v590_v27 = vpack.c.bf16 (!%p187_p2), %v230_v23, %v229_v22  ;;  %v231_v28 = vld [vmem:[%s820_s1 + $0x50] sm:$0xff] (!%p187_p2)  ;;  %v232_v29 = vld [vmem:[%s820_s1 + $0x58] sm:$0xff] (!%p187_p2)  ;;  %v611_v30 = vpack.c.bf16 (!%p187_p2), %v322_v26, %v321_v25  ;;  %v323_v31 = vld [vmem:[%s822_s3 + $0x40] sm:$0xff] (!%p187_p2) }
   0xc   : > { %582 = vmatpush3.bf16.msra.mxu0 (!%p187_p2), %v581_v7  ;;  %v324_v32 = vld [vmem:[%s822_s3 + $0x48] sm:$0xff] (!%p187_p2)  ;;  %v593_v33 = vpack.c.bf16 (!%p187_p2), %v232_v29, %v231_v28  ;;  %v233_v34 = vld [vmem:[%s820_s1 + $0x60] sm:$0xff] (!%p187_p2)  ;;  %v325_v37 = vld [vmem:[%s822_s3 + $0x50] sm:$0xff] (!%p187_p2) }
   0xd   : > { %583 = vmatprep.subr.bf16.mxu0 %v644_v3  ;;  %v234_v35 = vld [vmem:[%s820_s1 + $0x68] sm:$0xff]  ;;  %v614_v36 = vpack.c.bf16 %v324_v32, %v323_v31  ;;  %s826_s19 = smov (!%p212_p3, %s462_s19), 1  ;;  %v326_v38 = vld [vmem:[%s822_s3 + $0x58] sm:$0xff]  ;;  %v235_v40 = vld [vmem:[%s820_s1 + $0x70] sm:$0xff] }
   0xe   : > { %606 = vmatpush3.bf16.msra.mxu1 %v605_v18  ;;  %v596_v39 = vpack.c.bf16 %v234_v35, %v233_v34  ;;  %v236_v41 = vld [vmem:[%s820_s1 + $0x78] sm:$0xff]  ;;  %v617_v42 = vpack.c.bf16 %v326_v38, %v325_v37  ;;  %s467_s30 = sshll.u32 %s826_s19, 3  ;;  %v327_v43 = vld [vmem:[%s822_s3 + $0x60] sm:$0xff]  ;;  %v328_v44 = vld [vmem:[%s822_s3 + $0x68] sm:$0xff] }
   0xf   : > { %607 = vmatprep.subr.bf16.mxu1 %v644_v3  ;;  %v599_v45 = vpack.c.bf16 %v236_v41, %v235_v40  ;;  %s215_s12 = scalar_lea.vmem %s819_s0, %s467_s30  ;;  %v620_v46 = vpack.c.bf16 %v328_v44, %v327_v43  ;;  %v329_v48 = vld [vmem:[%s822_s3 + $0x70] sm:$0xff]  ;;  %v330_v49 = vld [vmem:[%s822_s3 + $0x78] sm:$0xff]  ;;  %v469_v51 = vld [vmem:[%s821_s2] ss:$0 sm:$0xff]  ;;  %s219_s24 = scalar_lea.vmem %s824_s5, %s467_s30 }
  0x10   : > { %585 = vmatpush3.bf16.msra.mxu0 %v584_v15  ;;  %v220_v47 = vld [vmem:[%s215_s12] sm:$0xff]  ;;  %v623_v50 = vpack.c.bf16 %v330_v49, %v329_v48 }
  0x11   : > { %586 = vmatprep.subr.bf16.mxu0 %v644_v3  ;;  %v470_v56 = vld [vmem:[%s823_s4] ss:$0 sm:$0xff] }
  0x12   : > { %609 = vmatpush3.bf16.msra.mxu1 %v608_v24 }
  0x13   : > { %610 = vmatprep.subr.bf16.mxu1 %v644_v3 }
  0x14   : > { %588 = vmatpush3.bf16.msra.mxu0 %v587_v21 }
  0x15   : > { %589 = vmatprep.subr.bf16.mxu0 %v644_v3 }
  0x16   : > { %612 = vmatpush3.bf16.msra.mxu1 %v611_v30 }
  0x17   : > { %613 = vmatprep.subr.bf16.mxu1 %v644_v3 }
  0x18   : > { %591 = vmatpush3.bf16.msra.mxu0 %v590_v27 }
  0x19   : > { %592 = vmatprep.subr.bf16.mxu0 %v644_v3 }
  0x1a   : > { %615 = vmatpush3.bf16.msra.mxu1 %v614_v36 }
  0x1b   : > { %616 = vmatprep.subr.bf16.mxu1 %v644_v3 }
  0x1c   : > { %594 = vmatpush3.bf16.msra.mxu0 %v593_v33 }
  0x1d   : > { %595 = vmatprep.subr.bf16.mxu0 %v644_v3 }
  0x1e   : > { %618 = vmatpush3.bf16.msra.mxu1 %v617_v42 }
  0x1f   : > { %619 = vmatprep.subr.bf16.mxu1 %v644_v3 }
  0x20   : > { %597 = vmatpush3.bf16.msra.mxu0 %v596_v39 }
  0x21   : > { %598 = vmatprep.subr.bf16.mxu0 %v644_v3 }
  0x22   : > { %621 = vmatpush3.bf16.msra.mxu1 %v620_v46 }
  0x23   : > { %622 = vmatprep.subr.bf16.mxu1 %v644_v3 }
  0x24   : > { %600 = vmatpush3.bf16.msra.mxu0 %v599_v45 }
  0x26   : > { %624 = vmatpush3.bf16.msra.mxu1 %v623_v50 }
  0x27   : > { %540 = vmatmul.mubr.f32.vlgmr.msra.gmra.mrb[0].mxu0 %v220_v47 }
  0xfa   : > { %v310_v52 = vpop.f32.mrb[0].mxu0 }
  0xfb   : > { %v311_v53 = vadd.f32 %v469_v51, %v310_v52  ;;  %v541_v54 = vpop.f32.mrb[1].mxu0 }
  0xfd   : > { %v314_v55 = vmax.f32 %v311_v53, 0.0 }
  0xff   : > { %575 = vmatmul.mubr.f32.vlgmr.msra.gmra.mrb[0].mxu1 %v314_v55 }
 0x1d2   : > { %v404_v57 = vpop.f32.mrb[0].mxu1 }
 0x1d3   : > { %v405_v58 = vadd.f32 %v470_v56, %v404_v57  ;;  %v576_v59 = vpop.f32.mrb[1].mxu1 }
 0x1d5   : > { %408 = vst [vmem:[%s219_s24] sm:$0xff] %v405_v58 }
 0x1d6 PF: > { %s15_s18 = sadd.s32 1, %s642_s18  }
 0x1d7   : > { %p12_p4 = scmp.ge.s32.totalorder %s15_s18, 4  }
 0x1d9   :  { %14 = sbr.rel (!%p12_p4) target bundleno = 1 (0x1), region = 70 }

</bundles_post_ra>
